<compile_context>
chip_gen: v6e
topology: v6e:2x2x1
jax: 0.10.0
libtpu: 0.0.40
codegen_flags: <defaults>
</compile_context>

<pallas_src>
import functools

import jax
import jax.numpy as jnp
from jax.experimental import pallas as pl
from jax.experimental.pallas import tpu as pltpu


def _round_up(x: int, m: int) -> int:
    return (x + m - 1) // m * m


def _lmsys_head_kernel(x_ref, w_ref, o_ref, *, precision):
    # x_ref: [tB, F]  hidden-state tile in its ORIGINAL dtype (cast happens in VMEM)
    # w_ref: [Lp, F]  weight, PyTorch layout, label axis zero-padded to Lp, compute dtype
    # o_ref: [tB, Lp] lane-dense logits in the compute dtype
    x = x_ref[...].astype(w_ref.dtype)  # no-op when compute dtype == input dtype
    o_ref[...] = jax.lax.dot_general(
        x,
        w_ref[...],
        dimension_numbers=(((1,), (1,)), ((), ())),  # 'bf,lf->bl' — both operands lane-dense
        preferred_element_type=jnp.float32,
        precision=precision,
    ).astype(o_ref.dtype)


def lmsys_head(hidden_states: jax.Array, weight: jax.Array, *,
               compute_dtype=None, force_pallas: bool = False) -> jax.Array:
    """Computes hidden_states @ weight.T (nn.Linear, bias=False).

    hidden_states: [B, in_features]
    weight:        [num_labels, in_features]  (PyTorch nn.Linear layout — NOT transposed)
    returns:       [B, num_labels] in hidden_states.dtype
    """
    B, F = hidden_states.shape
    L, F2 = weight.shape
    assert F == F2, "in_features mismatch"
    out_dtype = hidden_states.dtype

    if compute_dtype is None:
        compute_dtype = jnp.bfloat16 if hidden_states.dtype == jnp.float32 else hidden_states.dtype
    compute_dtype = jnp.dtype(compute_dtype)

    # Tiny-batch fallback: padding B to an MXU tile + pallas_call overhead is pure loss.
    if B < 256 and not force_pallas:
        logits = jnp.dot(hidden_states.astype(compute_dtype),
                         weight.astype(compute_dtype).T,
                         preferred_element_type=jnp.float32)
        return logits.astype(out_dtype)

    # Lane-dense output: pad label axis to a multiple of 128 (padded rows are zeros,
    # so padded logits are exact zeros and are sliced off below).
    Lp = _round_up(max(L, 128), 128)
    w = weight.astype(compute_dtype)
    if Lp != L:
        w = jnp.pad(w, ((0, Lp - L), (0, 0)))

    x_isz = jnp.dtype(hidden_states.dtype).itemsize
    c_isz = compute_dtype.itemsize

    # Batch tile: 512/1024 saturates the HBM roofline; larger tiles only shrink the grid
    # (starving the pipeline / second TC) and inflate VMEM.  Extra cap keeps the
    # double-buffered x tiles (in the ORIGINAL dtype) <= ~24 MiB for v7x's 64 MiB/TC.
    x_budget = 24 * 1024 * 1024
    tB_cap = max(128, (x_budget // (2 * F * x_isz)) // 128 * 128)
    if B <= 512:
        tB = min(B, tB_cap)                      # single block; tB == B is always legal
    else:
        tB = min(1024 if B >= 8192 else 512, tB_cap)

    grid = (pl.cdiv(B, tB),)                     # ragged edge block is masked by Pallas

    vmem_need = (2 * tB * F * x_isz              # double-buffered x tiles (original dtype)
                 + 2 * Lp * F * c_isz            # resident weight (double-buffered slot)
                 + 2 * tB * Lp * c_isz)          # double-buffered output tiles
    vmem_limit = int(min(max(int(vmem_need * 1.5) + (2 << 20), 32 * 1024 * 1024),
                         48 * 1024 * 1024))      # leave headroom on v7x's 64 MiB/TC

    cost = pl.CostEstimate(
        flops=2 * B * F * Lp,
        transcendentals=0,
        bytes_accessed=B * F * x_isz + Lp * F * c_isz + B * Lp * c_isz,
    )

    precision = jax.lax.Precision.HIGHEST if compute_dtype == jnp.float32 else None
    kernel = functools.partial(_lmsys_head_kernel, precision=precision)

    out_padded = pl.pallas_call(
        kernel,
        out_shape=jax.ShapeDtypeStruct((B, Lp), compute_dtype),
        grid=grid,
        in_specs=[
            pl.BlockSpec((tB, F), lambda i: (i, 0)),   # stream batch tiles (pipelined)
            pl.BlockSpec((Lp, F), lambda i: (0, 0)),   # constant block index -> weight stays
                                                       # resident, fetched once across the grid
        ],
        out_specs=pl.BlockSpec((tB, Lp), lambda i: (i, 0)),
        compiler_params=pltpu.CompilerParams(
            dimension_semantics=("parallel",),          # megacore-shard batch on v7x
            vmem_limit_bytes=vmem_limit,
        ),
        cost_estimate=cost,
    )(hidden_states, w)

    return out_padded[:B, :L].astype(out_dtype)


# TODO(synk): the Gemma2Model backbone, last-token Pooler and checkpoint weight loading of
# CustomGemma2ForClassification are not translated here; only the classification head
# (LMSYSHead) has a clean single-kernel Pallas equivalent.


if __name__ == "__main__":
    key = jax.random.PRNGKey(0)
    k_x1, k_w, k_x2 = jax.random.split(key, 3)

    # --- Case 1: module-scale tiny shapes (batch=2, hidden=32, num_labels=3),
    #             forcing the Pallas path so the kernel itself is exercised.
    B1, F1, L1 = 2, 32, 3
    x1 = jax.random.normal(k_x1, (B1, F1), dtype=jnp.float32)
    w1 = jax.random.normal(k_w, (L1, F1), dtype=jnp.float32) * 0.02
    logits1 = lmsys_head(x1, w1, force_pallas=True)
    jax.block_until_ready(logits1)
    assert logits1.shape == (B1, L1)
    ref1 = (jnp.dot(x1.astype(jnp.bfloat16), w1.astype(jnp.bfloat16).T,
                    preferred_element_type=jnp.float32)
            .astype(jnp.bfloat16).astype(jnp.float32))
    assert jnp.allclose(logits1, ref1, atol=1e-2, rtol=1e-2)
    assert jnp.allclose(logits1, x1 @ w1.T, atol=1e-2, rtol=5e-2)

    # --- Case 2: multi-step grid with a ragged edge block (700 rows, tB=512).
    B2, F2d, L2 = 700, 256, 3
    x2 = jax.random.normal(k_x2, (B2, F2d), dtype=jnp.float32)
    w2 = jax.random.normal(k_w, (L2, F2d), dtype=jnp.float32) * 0.02
    logits2 = lmsys_head(x2, w2)
    jax.block_until_ready(logits2)
    assert logits2.shape == (B2, L2)
    ref2 = (jnp.dot(x2.astype(jnp.bfloat16), w2.astype(jnp.bfloat16).T,
                    preferred_element_type=jnp.float32)
            .astype(jnp.bfloat16).astype(jnp.float32))
    assert jnp.allclose(logits2, ref2, atol=1e-2, rtol=1e-2)
    assert jnp.allclose(logits2, x2 @ w2.T, atol=1e-2, rtol=5e-2)

    # --- Case 3: full-precision path (compute_dtype=float32).
    logits3 = lmsys_head(x2, w2, compute_dtype=jnp.float32)
    jax.block_until_ready(logits3)
    ref3 = jnp.einsum("bf,lf->bl", x2, w2, precision=jax.lax.Precision.HIGHEST)
    assert jnp.allclose(logits3, ref3, atol=1e-4, rtol=1e-4)

    print("KERNEL_OK")
</pallas_src>

<mosaic_0001>
module attributes {stable_mosaic.version = 11 : i64} {
  func.func @_lmsys_head_kernel(%arg0: i32, %arg1: memref<2x32xf32, #tpu.memory_space<vmem>>, %arg2: memref<128x32xbf16, #tpu.memory_space<vmem>>, %arg3: memref<2x128xbf16, #tpu.memory_space<vmem>>) attributes {dimension_semantics = [#tpu.dimension_semantics<parallel>], iteration_bounds = array<i64: 1>, scalar_prefetch = 0 : i64, scratch_operands = 0 : i64, tpu.core_type = #tpu.core_type<tc>, window_params = [{transform_indices = @transform_0, window_bounds = array<i64: 2, 32>}, {pipeline_mode = #tpu.pipeline_mode<synchronous>, transform_indices = @transform_1, window_bounds = array<i64: 128, 32>}, {transform_indices = @transform_2, window_bounds = array<i64: 2, 128>}]} {
    %c0 = arith.constant 0 : index
    %c0_0 = arith.constant 0 : index
    %0 = vector.load %arg1[%c0, %c0_0] : memref<2x32xf32, #tpu.memory_space<vmem>>, vector<2x32xf32>
    %1 = arith.truncf %0 : vector<2x32xf32> to vector<2x32xbf16>
    %c0_1 = arith.constant 0 : index
    %c0_2 = arith.constant 0 : index
    %2 = vector.load %arg2[%c0_1, %c0_2] : memref<128x32xbf16, #tpu.memory_space<vmem>>, vector<128x32xbf16>
    %cst = arith.constant dense<0.000000e+00> : vector<2x128xf32>
    %3 = tpu.matmul %1, %2, %cst {dimension_numbers = #tpu.dot_dimension_numbers<[1], [1], [0], [0], [0, 0, 1, 0], [], []>} : vector<2x32xbf16>, vector<128x32xbf16>, vector<2x128xf32> -> vector<2x128xf32>
    %4 = arith.truncf %3 : vector<2x128xf32> to vector<2x128xbf16>
    %c0_3 = arith.constant 0 : index
    %c0_4 = arith.constant 0 : index
    %5 = vector.load %arg3[%c0_3, %c0_4] : memref<2x128xbf16, #tpu.memory_space<vmem>>, vector<2x128xbf16>
    tpu.vector_store %arg3[%c0_3, %c0_4], %4 {strides = array<i32>} : memref<2x128xbf16, #tpu.memory_space<vmem>>, vector<2x128xbf16>,
    return
  }
  func.func @transform_0(%arg0: i32) -> (i32, i32) {
    %c0_i32 = arith.constant 0 : i32
    %c0_i32_0 = arith.constant 0 : i32
    return %arg0, %c0_i32 : i32, i32
  }
  func.func @transform_1(%arg0: i32) -> (i32, i32) {
    %c0_i32 = arith.constant 0 : i32
    %c0_i32_0 = arith.constant 0 : i32
    %c0_i32_1 = arith.constant 0 : i32
    return %c0_i32, %c0_i32_0 : i32, i32
  }
  func.func @transform_2(%arg0: i32) -> (i32, i32) {
    %c0_i32 = arith.constant 0 : i32
    %c0_i32_0 = arith.constant 0 : i32
    return %arg0, %c0_i32 : i32, i32
  }
}

</mosaic_0001>

<bundles_post_ra>
// kernel: tpu_custom_call.1
= control target key start
LH: loop header
LB: loop body
LE: loop exit
PB: predicated region body
PF: predicated region fallthrough
CT: control target
= control target key end

     0   :  { %v226_v1 = vmov 0.0   ;;  %vm71_vm0 = vcmask 261120   ;;  %s283_s0 = inlined_call_operand.vmem [shape: f32[2,32], index: 0, kind: input, shape index: {}]   ;;  %s284_s1 = inlined_call_operand.vmem [shape: bf16[128,32], index: 1, kind: input, shape index: {}]   ;;  %s285_s2 = inlined_call_operand.hbm [shape: bf16[2,128], index: 2, kind: output, shape index: {}]  }
   0x1   :  { %v196_v0 = vld [vmem:[%s284_s1 + $0x38] sm:$0xff]   ;;  %173 = vmatprep.subr.bf16.mxu0 %v226_v1  ;;  %v197_v3 = vld [vmem:[%s284_s1 + $0x30] sm:$0xff]  }
   0x2   :  { %v97_v2 = vsel %vm71_vm0, %v196_v0, 0  ;;  %v94_v4 = vsel %vm71_vm0, %v197_v3, 0 }
   0x3   :  { %174 = vmatpush3.bf16.xpose.msra.mxu0 %v97_v2 }
   0x4   :  { %175 = vmatprep.subr.bf16.mxu0 %v226_v1 }
   0x5   :  { %7 = vsyncpa [#allocation3], 0  ;;  %vm227_vm1 = vmmov 0   ;;  %v198_v5 = vld [vmem:[%s284_s1 + $0x28] sm:$0xff]   ;;  %v199_v7 = vld [vmem:[%s284_s1 + $0x20] sm:$0xff]   ;;  %s228_s27 = smov [#allocation2]  }
   0x6   :  { %189 = vmatprep.mubr.msk.bf16.mxu0 %vm227_vm1, %v226_v1  ;;  %v91_v6 = vsel %vm71_vm0, %v198_v5, 0  ;;  %v88_v8 = vsel %vm71_vm0, %v199_v7, 0  ;;  %v200_v9 = vld [vmem:[%s284_s1 + $0x18] sm:$0xff]   ;;  %v201_v11 = vld [vmem:[%s284_s1 + $0x10] sm:$0xff]   ;;  %v202_v13 = vld [vmem:[%s284_s1 + $0x8] sm:$0xff]   ;;  %s147_s28 = sshll.u32 %s228_s27, 4  ;;  %s148_s28 = int_to_ptr.vmem [resolvable:$true] %s147_s28 }
   0x7   :  { %v85_v10 = vsel %vm71_vm0, %v200_v9, 0  ;;  %v82_v12 = vsel %vm71_vm0, %v201_v11, 0  ;;  %v79_v14 = vsel %vm71_vm0, %v202_v13, 0  ;;  %v203_v15 = vld [vmem:[%s284_s1] sm:$0xff]   ;;  %s204_s29 = scalar_lea.vmem %s148_s28, 16  ;;  %s208_s1 = scalar_lea.vmem %s148_s28, 32 }
   0x8   :  { %v76_v16 = vsel %vm71_vm0, %v203_v15, 0  ;;  %v13_v17 = vld [vmem:[%s283_s0] sm:$0x3]  ;;  %p205_p0 = scmp.ne.s32.totalorder %s148_s28, %s204_s29  ;;  %p209_p1 = scmp.lt.s32.totalorder %s148_s28, %s148_s28 }
   0x9   :  { %v14_v18 = vpack.c.bf16 %v13_v17, %v13_v17  ;;  %p210_p2 = scmp.lt.s32.totalorder %s208_s1, %s204_s29 }
   0xb   :  { %176 = vmatpush3.bf16.xpose.msra.mxu0 %v94_v4  ;;  %p211_p3 = por %p210_p2, %p209_p1 }
   0xc   :  { %177 = vmatprep.subr.bf16.mxu0 %v226_v1 }
   0xd   :  { %p212_p4 = pnand %p211_p3, %p205_p0 }
  0x13   :  { %178 = vmatpush3.bf16.xpose.msra.mxu0 %v91_v6 }
  0x14   :  { %179 = vmatprep.subr.bf16.mxu0 %v226_v1 }
  0x1b   :  { %180 = vmatpush3.bf16.xpose.msra.mxu0 %v88_v8 }
  0x1c   :  { %181 = vmatprep.subr.bf16.mxu0 %v226_v1 }
  0x23   :  { %182 = vmatpush3.bf16.xpose.msra.mxu0 %v85_v10 }
  0x24   :  { %183 = vmatprep.subr.bf16.mxu0 %v226_v1 }
  0x2b   :  { %184 = vmatpush3.bf16.xpose.msra.mxu0 %v82_v12 }
  0x2c   :  { %185 = vmatprep.subr.bf16.mxu0 %v226_v1 }
  0x33   :  { %186 = vmatpush3.bf16.xpose.msra.mxu0 %v79_v14 }
  0x34   :  { %187 = vmatprep.subr.bf16.mxu0 %v226_v1 }
  0x3b   :  { %188 = vmatpush3.bf16.xpose.msra.mxu0 %v76_v16 }
  0x42   :  { %190 = vmatmul.mubr.msk.bf16.vlgmr.msra.gmra.mxu0 %vm71_vm0, %v14_v18 }
 0x102   :  { %v133_v19 = vpop.f32.mrf.mxu0 }
 0x103   :  { %v139_v20 = vpack.c.bf16 %v133_v19, %v133_v19 }
 0x104   :  { %v191_v21 = vpop.f32.mrf.mxu0 }
 0x105   :  { %140 = vst [vmem:[#allocation2] sm:$0x1] %v139_v20 }
 0x106   :  { %v136_v22 = vpop.f32.mrf.mxu0 }
 0x107   :  { %215 = shalt.err (!%p212_p4)
}
 0x108   :  { %150 = dma.vmem_to_hbm [thread:$0]  %s148_s28, 16, %s285_s2, [#allocation3]   ;;  %v192_v23 = vpop.f32.mrf.mxu0 }
 0x109   :  { %224 = dma.done.wait [#allocation3], 16  }
 0x10a   :  { %225 = vsyncadd [#allocation3], 4294967280 }
 0x10b   :  { %154 = vsyncpa [#allocation3], 1 }

</bundles_post_ra>
